<compile_context>
chip_gen: v7x
topology: tpu7x:2x2x1
jax: 0.10.0
libtpu: 0.0.40
codegen_flags: <defaults>
</compile_context>

<pallas_src>
import functools
import math

import jax
import jax.numpy as jnp
from jax import lax
from jax.experimental import pallas as pl
from jax.experimental.pallas import tpu as pltpu


def _qkv_proj_kernel(x_ref, wq_ref, wk_ref, wv_ref, qb_ref, vb_ref,
                     q_ref, k_ref, v_ref, *, scale):
    """Q/K/V projection for one (batch, seq-tile); lane-dense (tile, H) outputs."""
    x = x_ref[0]                                                    # (tile, H) bf16

    # Full-width matmuls keep the MXU fed (N = H); accumulate in f32.
    q = jnp.dot(x, wq_ref[...], preferred_element_type=jnp.float32)
    k = jnp.dot(x, wk_ref[...], preferred_element_type=jnp.float32)
    v = jnp.dot(x, wv_ref[...], preferred_element_type=jnp.float32)

    # K has no bias (VideoMAE k_bias == 0); 1/sqrt(dh) folded into Q here so the
    # attention kernel never scales (q_tile, S) score blocks.
    q = (q + qb_ref[...]) * scale
    v = v + vb_ref[...]

    # Lane-dense stores: the full H is the last dim (no per-head head split).
    q_ref[0] = q.astype(q_ref.dtype)
    k_ref[0] = k.astype(k_ref.dtype)
    v_ref[0] = v.astype(v_ref.dtype)


def _attn_kernel(q_ref, k_ref, v_ref, wo_ref, ob_ref, out_ref,
                 *, num_heads, head_size):
    """Attention for one (batch, q-tile) with full-S K/V resident.

    Per head: single-pass softmax over a (q_tile, S) score block; the per-head
    contexts are concatenated to (q_tile, H) and projected with ONE full-depth
    Wo matmul (+ o_bias)."""
    q = q_ref[0]                                                    # (tq, H) pre-scaled bf16
    k = k_ref[0]                                                    # (S,  H) bf16
    v = v_ref[0]                                                    # (S,  H) bf16

    ctx_parts = []
    for h in range(num_heads):                                      # static head loop
        sl = slice(h * head_size, (h + 1) * head_size)
        q_h = q[:, sl]                                              # (tq, dh)
        k_h = k[:, sl]                                              # (S, dh)
        v_h = v[:, sl]                                              # (S, dh)

        # Q @ K^T over the full sequence; no transposed copy of K.
        s = lax.dot_general(q_h, k_h, (((1,), (1,)), ((), ())),
                            preferred_element_type=jnp.float32)     # (tq, S)

        # Single-pass softmax: the whole score row is resident, so no running
        # max / denom / rescale.  Attention dropout: identity at inference;
        # head_mask: None.
        m = jnp.max(s, axis=-1, keepdims=True)
        p = jnp.exp(s - m)
        l = jnp.sum(p, axis=-1, keepdims=True)
        p = p * pl.reciprocal(l, approx=True)

        ctx_parts.append(jnp.dot(p.astype(v_h.dtype), v_h,
                                 preferred_element_type=jnp.float32))

    # Assemble (tq, H) context and apply the output projection once
    # (one K=H matmul instead of num_heads rank-dh accumulations).
    ctx = jnp.concatenate(ctx_parts, axis=-1)                       # (tq, H) f32
    out = jnp.dot(ctx.astype(wo_ref.dtype), wo_ref[...],
                  preferred_element_type=jnp.float32) + ob_ref[...]
    # Hidden dropout of VideoMAESelfOutput: identity at inference.
    out_ref[0] = out.astype(out_ref.dtype)


def videomae_attention(x, wq_t, wk_t, wv_t, q_bias, v_bias, wo_t, o_bias,
                       *, num_heads, q_tile=224, s_tile=392,
                       compute_dtype=jnp.bfloat16):
    """x: (B, S, H); w*_t: (H, H) transposed to [in, out]; biases: (1, H)."""
    B, S, H = x.shape
    assert H % num_heads == 0
    dh = H // num_heads
    scale = 1.0 / math.sqrt(dh)

    q_tile = min(q_tile, S)
    s_tile = min(s_tile, S)
    assert S % q_tile == 0 and S % s_tile == 0, (
        "sequence length must be divisible by the tile sizes "
        "(for VideoMAE S=1568 use q_tile=224, s_tile=392)")

    out_dtype = x.dtype
    # bf16 MXU operands on every TPU generation; biases stay f32 (added to the
    # f32 accumulators inside the kernels).
    x_c = x.astype(compute_dtype)
    wq_c = wq_t.astype(compute_dtype)
    wk_c = wk_t.astype(compute_dtype)
    wv_c = wv_t.astype(compute_dtype)
    wo_c = wo_t.astype(compute_dtype)
    qb = q_bias.astype(jnp.float32)
    vb = v_bias.astype(jnp.float32)
    ob = o_bias.astype(jnp.float32)

    # Budget leaves headroom on v7x's 64 MiB physical VMEM; trivial on v5e/v6e.
    cparams = pltpu.CompilerParams(
        dimension_semantics=("parallel", "parallel"),
        vmem_limit_bytes=48 * 1024 * 1024)

    # Constant-index weights never change across the grid -> single-buffered
    # (reclaims VMEM, matters most on v7x).
    weight_spec = pl.BlockSpec((H, H), lambda b, s: (0, 0),
                               pipeline_mode=pl.Buffered(1))
    bias_spec = pl.BlockSpec((1, H), lambda b, s: (0, 0))

    # ---- Call 1: Q/K/V projection, lane-dense (B, S, H) bf16 intermediates --
    qkv_shape = jax.ShapeDtypeStruct((B, S, H), compute_dtype)
    seq_spec = pl.BlockSpec((1, s_tile, H), lambda b, s: (b, s, 0))
    q_p, k_p, v_p = pl.pallas_call(
        functools.partial(_qkv_proj_kernel, scale=scale),
        out_shape=(qkv_shape, qkv_shape, qkv_shape),
        grid=(B, S // s_tile),
        in_specs=[
            seq_spec,                                   # x tile
            weight_spec, weight_spec, weight_spec,      # Wq^T, Wk^T, Wv^T
            bias_spec, bias_spec,                       # q_bias, v_bias
        ],
        out_specs=(seq_spec, seq_spec, seq_spec),
        compiler_params=cparams,
    )(x_c, wq_c, wk_c, wv_c, qb, vb)

    # ---- Call 2: attention (full-S resident K/V) + fused output projection --
    nq = S // q_tile
    # K/V index_map ignores the q-tile index -> DMA'd once per batch element,
    # not once per q-tile.
    kv_spec = pl.BlockSpec((1, S, H), lambda b, qi: (b, 0, 0))

    out = pl.pallas_call(
        functools.partial(_attn_kernel, num_heads=num_heads, head_size=dh),
        out_shape=jax.ShapeDtypeStruct((B, S, H), out_dtype),
        grid=(B, nq),
        in_specs=[
            pl.BlockSpec((1, q_tile, H), lambda b, qi: (b, qi, 0)),   # Q tile
            kv_spec,                                                  # K (full S)
            kv_spec,                                                  # V (full S)
            pl.BlockSpec((H, H), lambda b, qi: (0, 0),
                         pipeline_mode=pl.Buffered(1)),               # Wo^T
            pl.BlockSpec((1, H), lambda b, qi: (0, 0)),               # o_bias
        ],
        out_specs=pl.BlockSpec((1, q_tile, H), lambda b, qi: (b, qi, 0)),
        compiler_params=cparams,
    )(q_p, k_p, v_p, wo_c, ob)
    return out


def _reference(x, wq_t, wk_t, wv_t, q_bias, v_bias, wo_t, o_bias, *, num_heads):
    """Plain-JAX f32 reference mirroring the PyTorch forward."""
    B, S, H = x.shape
    dh = H // num_heads
    q = x @ wq_t + q_bias[0]
    k = x @ wk_t
    v = x @ wv_t + v_bias[0]

    def split(t):  # (B, S, H) -> (B, nh, S, dh)
        return t.reshape(B, S, num_heads, dh).transpose(0, 2, 1, 3)

    ql, kl, vl = split(q), split(k), split(v)
    scores = jnp.einsum("bhqd,bhkd->bhqk", ql, kl) / math.sqrt(dh)
    probs = jax.nn.softmax(scores, axis=-1)
    ctx = jnp.einsum("bhqk,bhkd->bhqd", probs, vl)
    ctx = ctx.transpose(0, 2, 1, 3).reshape(B, S, H)
    return ctx @ wo_t + o_bias[0]


if __name__ == "__main__":
    B, S, H = 2, 32, 32
    NUM_HEADS = 4

    key = jax.random.PRNGKey(0)
    kx, kq, kk, kv, kqb, kvb, ko, kob = jax.random.split(key, 8)

    x = jax.random.normal(kx, (B, S, H), dtype=jnp.float32)

    # Deterministic synthetic parameters (weights are [in, out] = W^T of torch Linear).
    wq_t = 0.05 * jax.random.normal(kq, (H, H), dtype=jnp.float32)
    wk_t = 0.05 * jax.random.normal(kk, (H, H), dtype=jnp.float32)
    wv_t = 0.05 * jax.random.normal(kv, (H, H), dtype=jnp.float32)
    q_bias = 0.05 * jax.random.normal(kqb, (1, H), dtype=jnp.float32)
    v_bias = 0.05 * jax.random.normal(kvb, (1, H), dtype=jnp.float32)
    wo_t = 0.05 * jax.random.normal(ko, (H, H), dtype=jnp.float32)
    o_bias = 0.05 * jax.random.normal(kob, (1, H), dtype=jnp.float32)

    # Small tiles so the demo exercises multiple projection / q-tiles.
    out = videomae_attention(x, wq_t, wk_t, wv_t, q_bias, v_bias, wo_t, o_bias,
                             num_heads=NUM_HEADS, q_tile=16, s_tile=16)
    out = jax.block_until_ready(out)

    ref = _reference(x, wq_t, wk_t, wv_t, q_bias, v_bias, wo_t, o_bias,
                     num_heads=NUM_HEADS)
    assert out.shape == (B, S, H)
    # Tolerance accounts for bf16 MXU operands + approx EUP reciprocal (f32 acc).
    assert jnp.allclose(out, ref, atol=2e-2, rtol=2e-2), "mismatch vs reference"

    print("KERNEL_OK")
</pallas_src>

<mosaic_0001>
module attributes {stable_mosaic.version = 11 : i64} {
  func.func @_qkv_proj_kernel(%arg0: i32, %arg1: i32, %arg2: memref<1x16x32xbf16, #tpu.memory_space<vmem>>, %arg3: memref<32x32xbf16, #tpu.memory_space<vmem>>, %arg4: memref<32x32xbf16, #tpu.memory_space<vmem>>, %arg5: memref<32x32xbf16, #tpu.memory_space<vmem>>, %arg6: memref<1x32xf32, #tpu.memory_space<vmem>>, %arg7: memref<1x32xf32, #tpu.memory_space<vmem>>, %arg8: memref<1x16x32xbf16, #tpu.memory_space<vmem>>, %arg9: memref<1x16x32xbf16, #tpu.memory_space<vmem>>, %arg10: memref<1x16x32xbf16, #tpu.memory_space<vmem>>) attributes {dimension_semantics = [#tpu.dimension_semantics<parallel>, #tpu.dimension_semantics<parallel>], iteration_bounds = array<i64: 2, 2>, scalar_prefetch = 0 : i64, scratch_operands = 0 : i64, tpu.core_type = #tpu.core_type<tc>, window_params = [{transform_indices = @transform_0, window_bounds = array<i64: 1, 16, 32>}, {pipeline_mode = #tpu.pipeline_mode<synchronous>, transform_indices = @transform_1, window_bounds = array<i64: 32, 32>}, {pipeline_mode = #tpu.pipeline_mode<synchronous>, transform_indices = @transform_2, window_bounds = array<i64: 32, 32>}, {pipeline_mode = #tpu.pipeline_mode<synchronous>, transform_indices = @transform_3, window_bounds = array<i64: 32, 32>}, {pipeline_mode = #tpu.pipeline_mode<synchronous>, transform_indices = @transform_4, window_bounds = array<i64: 1, 32>}, {pipeline_mode = #tpu.pipeline_mode<synchronous>, transform_indices = @transform_5, window_bounds = array<i64: 1, 32>}, {transform_indices = @transform_6, window_bounds = array<i64: 1, 16, 32>}, {transform_indices = @transform_7, window_bounds = array<i64: 1, 16, 32>}, {transform_indices = @transform_8, window_bounds = array<i64: 1, 16, 32>}]} {
    %c0 = arith.constant 0 : index
    %c0_0 = arith.constant 0 : index
    %c0_1 = arith.constant 0 : index
    %0 = vector.load %arg2[%c0, %c0_0, %c0_1] : memref<1x16x32xbf16, #tpu.memory_space<vmem>>, vector<1x16x32xbf16>
    %1 = vector.shape_cast %0 : vector<1x16x32xbf16> to vector<16x32xbf16>
    %c0_2 = arith.constant 0 : index
    %c0_3 = arith.constant 0 : index
    %2 = vector.load %arg3[%c0_2, %c0_3] : memref<32x32xbf16, #tpu.memory_space<vmem>>, vector<32x32xbf16>
    %cst = arith.constant dense<0.000000e+00> : vector<16x32xf32>
    %3 = tpu.matmul %1, %2, %cst {dimension_numbers = #tpu.dot_dimension_numbers<[1], [0], [0], [1], [0, 0, 1, 1], [], []>} : vector<16x32xbf16>, vector<32x32xbf16>, vector<16x32xf32> -> vector<16x32xf32>
    %c0_4 = arith.constant 0 : index
    %c0_5 = arith.constant 0 : index
    %4 = vector.load %arg4[%c0_4, %c0_5] : memref<32x32xbf16, #tpu.memory_space<vmem>>, vector<32x32xbf16>
    %cst_6 = arith.constant dense<0.000000e+00> : vector<16x32xf32>
    %5 = tpu.matmul %1, %4, %cst_6 {dimension_numbers = #tpu.dot_dimension_numbers<[1], [0], [0], [1], [0, 0, 1, 1], [], []>} : vector<16x32xbf16>, vector<32x32xbf16>, vector<16x32xf32> -> vector<16x32xf32>
    %c0_7 = arith.constant 0 : index
    %c0_8 = arith.constant 0 : index
    %6 = vector.load %arg5[%c0_7, %c0_8] : memref<32x32xbf16, #tpu.memory_space<vmem>>, vector<32x32xbf16>
    %cst_9 = arith.constant dense<0.000000e+00> : vector<16x32xf32>
    %7 = tpu.matmul %1, %6, %cst_9 {dimension_numbers = #tpu.dot_dimension_numbers<[1], [0], [0], [1], [0, 0, 1, 1], [], []>} : vector<16x32xbf16>, vector<32x32xbf16>, vector<16x32xf32> -> vector<16x32xf32>
    %c0_10 = arith.constant 0 : index
    %c0_11 = arith.constant 0 : index
    %8 = vector.load %arg6[%c0_10, %c0_11] : memref<1x32xf32, #tpu.memory_space<vmem>>, vector<1x32xf32>
    %9 = vector.broadcast %8 : vector<1x32xf32> to vector<16x32xf32>
    %10 = arith.addf %3, %9 : vector<16x32xf32>
    %cst_12 = arith.constant 0.353553385 : f32
    %11 = vector.broadcast %cst_12 : f32 to vector<16x32xf32>
    %12 = arith.mulf %10, %11 : vector<16x32xf32>
    %c0_13 = arith.constant 0 : index
    %c0_14 = arith.constant 0 : index
    %13 = vector.load %arg7[%c0_13, %c0_14] : memref<1x32xf32, #tpu.memory_space<vmem>>, vector<1x32xf32>
    %14 = vector.broadcast %13 : vector<1x32xf32> to vector<16x32xf32>
    %15 = arith.addf %7, %14 : vector<16x32xf32>
    %16 = arith.truncf %12 : vector<16x32xf32> to vector<16x32xbf16>
    %c0_15 = arith.constant 0 : index
    %c0_16 = arith.constant 0 : index
    %c0_17 = arith.constant 0 : index
    %17 = vector.load %arg8[%c0_15, %c0_16, %c0_17] : memref<1x16x32xbf16, #tpu.memory_space<vmem>>, vector<1x16x32xbf16>
    %18 = vector.shape_cast %17 : vector<1x16x32xbf16> to vector<16x32xbf16>
    %19 = vector.shape_cast %16 : vector<16x32xbf16> to vector<1x16x32xbf16>
    tpu.vector_store %arg8[%c0_15, %c0_16, %c0_17], %19 {strides = array<i32>} : memref<1x16x32xbf16, #tpu.memory_space<vmem>>, vector<1x16x32xbf16>,
    %20 = arith.truncf %5 : vector<16x32xf32> to vector<16x32xbf16>
    %c0_18 = arith.constant 0 : index
    %c0_19 = arith.constant 0 : index
    %c0_20 = arith.constant 0 : index
    %21 = vector.load %arg9[%c0_18, %c0_19, %c0_20] : memref<1x16x32xbf16, #tpu.memory_space<vmem>>, vector<1x16x32xbf16>
    %22 = vector.shape_cast %21 : vector<1x16x32xbf16> to vector<16x32xbf16>
    %23 = vector.shape_cast %20 : vector<16x32xbf16> to vector<1x16x32xbf16>
    tpu.vector_store %arg9[%c0_18, %c0_19, %c0_20], %23 {strides = array<i32>} : memref<1x16x32xbf16, #tpu.memory_space<vmem>>, vector<1x16x32xbf16>,
    %24 = arith.truncf %15 : vector<16x32xf32> to vector<16x32xbf16>
    %c0_21 = arith.constant 0 : index
    %c0_22 = arith.constant 0 : index
    %c0_23 = arith.constant 0 : index
    %25 = vector.load %arg10[%c0_21, %c0_22, %c0_23] : memref<1x16x32xbf16, #tpu.memory_space<vmem>>, vector<1x16x32xbf16>
    %26 = vector.shape_cast %25 : vector<1x16x32xbf16> to vector<16x32xbf16>
    %27 = vector.shape_cast %24 : vector<16x32xbf16> to vector<1x16x32xbf16>
    tpu.vector_store %arg10[%c0_21, %c0_22, %c0_23], %27 {strides = array<i32>} : memref<1x16x32xbf16, #tpu.memory_space<vmem>>, vector<1x16x32xbf16>,
    return
  }
  func.func @transform_0(%arg0: i32, %arg1: i32) -> (i32, i32, i32) {
    %c0_i32 = arith.constant 0 : i32
    %c0_i32_0 = arith.constant 0 : i32
    return %arg0, %arg1, %c0_i32 : i32, i32, i32
  }
  func.func @transform_1(%arg0: i32, %arg1: i32) -> (i32, i32) {
    %c0_i32 = arith.constant 0 : i32
    %c0_i32_0 = arith.constant 0 : i32
    %c0_i32_1 = arith.constant 0 : i32
    return %c0_i32, %c0_i32_0 : i32, i32
  }
  func.func @transform_2(%arg0: i32, %arg1: i32) -> (i32, i32) {
    %c0_i32 = arith.constant 0 : i32
    %c0_i32_0 = arith.constant 0 : i32
    %c0_i32_1 = arith.constant 0 : i32
    return %c0_i32, %c0_i32_0 : i32, i32
  }
  func.func @transform_3(%arg0: i32, %arg1: i32) -> (i32, i32) {
    %c0_i32 = arith.constant 0 : i32
    %c0_i32_0 = arith.constant 0 : i32
    %c0_i32_1 = arith.constant 0 : i32
    return %c0_i32, %c0_i32_0 : i32, i32
  }
  func.func @transform_4(%arg0: i32, %arg1: i32) -> (i32, i32) {
    %c0_i32 = arith.constant 0 : i32
    %c0_i32_0 = arith.constant 0 : i32
    %c0_i32_1 = arith.constant 0 : i32
    return %c0_i32, %c0_i32_0 : i32, i32
  }
  func.func @transform_5(%arg0: i32, %arg1: i32) -> (i32, i32) {
    %c0_i32 = arith.constant 0 : i32
    %c0_i32_0 = arith.constant 0 : i32
    %c0_i32_1 = arith.constant 0 : i32
    return %c0_i32, %c0_i32_0 : i32, i32
  }
  func.func @transform_6(%arg0: i32, %arg1: i32) -> (i32, i32, i32) {
    %c0_i32 = arith.constant 0 : i32
    %c0_i32_0 = arith.constant 0 : i32
    return %arg0, %arg1, %c0_i32 : i32, i32, i32
  }
  func.func @transform_7(%arg0: i32, %arg1: i32) -> (i32, i32, i32) {
    %c0_i32 = arith.constant 0 : i32
    %c0_i32_0 = arith.constant 0 : i32
    return %arg0, %arg1, %c0_i32 : i32, i32, i32
  }
  func.func @transform_8(%arg0: i32, %arg1: i32) -> (i32, i32, i32) {
    %c0_i32 = arith.constant 0 : i32
    %c0_i32_0 = arith.constant 0 : i32
    return %arg0, %arg1, %c0_i32 : i32, i32, i32
  }
}

</mosaic_0001>

<bundles_post_ra>
// kernel: tpu_custom_call.1
= control target key start
LH: loop header
LB: loop body
LE: loop exit
PB: predicated region body
PF: predicated region fallthrough
CT: control target
= control target key end

     0   :  { %s1882_s0 = inlined_call_operand.hbm [shape: bf16[2,32,32], index: 0, kind: input, shape index: {}]   ;;  %s1883_s1 = inlined_call_operand.hbm [shape: bf16[32,32], index: 1, kind: input, shape index: {}]   ;;  %s1884_s2 = inlined_call_operand.hbm [shape: bf16[32,32], index: 2, kind: input, shape index: {}]   ;;  %s1885_s3 = inlined_call_operand.hbm [shape: bf16[32,32], index: 3, kind: input, shape index: {}]   ;;  %s1886_s4 = inlined_call_operand.vmem [shape: f32[1,32], index: 4, kind: input, shape index: {}]   ;;  %s1887_s5 = inlined_call_operand.vmem [shape: f32[1,32], index: 5, kind: input, shape index: {}]   ;;  %s1888_s6 = inlined_call_operand.hbm [shape: bf16[2,32,32], index: 6, kind: output, shape index: {0}]   ;;  %s1889_s7 = inlined_call_operand.hbm [shape: bf16[2,32,32], index: 7, kind: output, shape index: {1}]   ;;  %s1890_s8 = inlined_call_operand.hbm [shape: bf16[2,32,32], index: 8, kind: output, shape index: {2}]  }
   0x1   :  { %1903 = sst [smem:[#allocation22_spill]] %s1883_s1 }
   0x2   :  { %1904 = sst [smem:[#allocation23_spill]] %s1884_s2 }
   0x3   :  { %1905 = sst [smem:[#allocation24_spill]] %s1885_s3 }
   0x4   :  { %1906 = sst [smem:[#allocation25_spill]] %s1887_s5 }
   0x5   :  { %1907 = sst [smem:[#allocation26_spill]] %s1888_s6 }
   0x6   :  { %1908 = sst [smem:[#allocation27_spill]] %s1889_s7 }
   0x7   :  { %1909 = sst [smem:[#allocation28_spill]] %s1890_s8 }
   0x8   :  { %14 = vsyncpa [#allocation3], 0 }
   0x9   :  { %16 = vsyncpa [#allocation3 + $0x1], 0 }
   0xa   :  { %17 = vsyncpa [#allocation6], 0 }
   0xb   :  { %18 = vsyncpa [#allocation9], 0 }
   0xc   :  { %19 = vsyncpa [#allocation4], 0 }
   0xd   :  { %21 = vsyncpa [#allocation4 + $0x1], 0 }
   0xe   :  { %22 = vsyncpa [#allocation12], 0 }
   0xf   :  { %24 = vsyncpa [#allocation12 + $0x1], 0  ;;  %s1452_s27 = smov 0   ;;  %s1454_s28 = smov 0  }
  0x10   :  { %s1456_s29 = smov 0   ;;  %s1458_s30 = smov 0  }
  0x11   :  { %s1460_s9 = smov 0   ;;  %s1462_s10 = smov 0  }
  0x12   :  { %s1464_s11 = smov 0   ;;  %s1466_s12 = smov 0  }
  0x13 LB: > { %1910 = sst [smem:[#allocation19_spill]] %s1364_s27  ;;  %s1493_s13 = sadd.s32 4294967295, %s1392_s12   ;;  %s1392_s12 = sphi %s1466_s12, %s30_s12   ;;  %s1388_s11 = sphi %s1464_s11, %s1949_s11   ;;  %s1384_s10 = sphi %s1462_s10, %s1948_s10   ;;  %s1380_s9 = sphi %s1460_s9, %s1947_s9   ;;  %s1376_s30 = sphi %s1458_s30, %s1946_s30   ;;  %s1372_s29 = sphi %s1456_s29, %s1945_s29   ;;  %s1368_s28 = sphi %s1454_s28, %s1944_s28   ;;  %s1364_s27 = sphi %s1452_s27, %s1943_s27  }
  0x14   : > { %s1891_s14 = sadd.s32 4294967294, %s1392_s12   ;;  %p64_p0 = scmp.ne.s32.totalorder %s1368_s28, %s1364_s27 }
  0x15   : > { %p1894_p1 = scmp.eq.s32.totalorder %s1493_s13, 0  ;;  %p201_p3 = scmp.eq.s32.totalorder %s1891_s14, 3 }
  0x16   : > { %p892_p5 = scmp.ge.s32.totalorder %s1392_s12, 1  ;;  %p264_p7 = scmp.lt.s32.totalorder %s1392_s12, 5 }
  0x17   : > { %p1504_p4 = por %p1894_p1, %p64_p0  ;;  %p1509_p6 = por %p201_p3, %p64_p0 }
  0x18   : > { %p1514_p8 = pnand %p892_p5, %p264_p7  ;;  %s1394_s18 = smov [#allocation5]  }
  0x19   : > { %s1911_s15 = scalar_select %p1504_p4, 1, 0 }
  0x1a   : > { %s1912_s16 = scalar_select %p1509_p6, 1, 0 }
  0x1b   : > { %s1914_s17 = scalar_select %p1514_p8, 1, 0 }
  0x1c   : > { %1913 = sst [smem:[#allocation20_spill]] %s1912_s16  ;;  %s276_s19 = sshll.u32 %s1394_s18, 4  ;;  %s1518_s19 = int_to_ptr.vmem [resolvable:$true] %s276_s19 }
  0x1d   : > { %p1000_p9 = pneg %p1514_p8  ;;  %s1395_s21 = smov [#allocation7]  }
  0x1e   : > { %s289_s22 = sshll.u32 %s1395_s21, 4  ;;  %s1396_s23 = smov [#allocation8]   ;;  %s1528_s22 = int_to_ptr.vmem [resolvable:$true] %s289_s22 }
  0x1f   : > { %p1524_p10 = pnand %p1000_p9, %p1894_p1  ;;  %s1530_s24 = sshll.u32 %s1396_s23, 4  ;;  %s303_s24 = int_to_ptr.vmem [resolvable:$true] %s1530_s24 }
  0x20   : > { %s1916_s1 = sld [smem:[#allocation22_spill]] }
  0x21   : > { %p1540_p12 = pneg %p1524_p10 }
  0x26   : > { %s1112_s18 = scalar_lea.hbm %s1916_s1, 256 }
  0x27   : > { %p1113_p11 = scmp.ne.s32.totalorder %s1916_s1, %s1112_s18  ;;  %p1119_p3 = scmp.lt.u32.totalorder %s1112_s18, %s1916_s1 }
  0x29   : > { %p1115_p13 = pnand %p1540_p12, %p1113_p11 }
  0x2b   : > { %p1116_p0 = pneg %p1115_p13 }
  0x2d   : > { %p1121_p5 = pnand %p1119_p3, %p1116_p0 }
  0x2f   : > { %1124 = shalt.err (!%p1121_p5)
}
  0x30   : > { %s1125_s14 = scalar_lea.vmem %s1518_s19, 256  ;;  %p1133_p2 = scmp.lt.s32.totalorder %s1518_s19, %s1518_s19 }
  0x31   : > { %p1126_p7 = scmp.ne.s32.totalorder %s1518_s19, %s1125_s14  ;;  %p1134_p6 = scmp.lt.s32.totalorder %s1125_s14, %s1125_s14 }
  0x33   : > { %p1128_p9 = pnand %p1126_p7, %p1540_p12  ;;  %p1135_p11 = por %p1134_p6, %p1133_p2 }
  0x35   : > { %p1129_p1 = pneg %p1128_p9 }
  0x37   : > { %p1136_p13 = pnand %p1135_p11, %p1129_p1 }
  0x39   : > { %1139 = shalt.err (!%p1136_p13)
}
  0x3a   : > { %s1900_s16 = smov 64   ;;  %s1901_s25 = smov 4  }
  0x3b   : > { %1003 = dma.hbm_to_vmem [thread:$0]  (!%p1524_p10), %s1916_s1, 256, %s1518_s19, [#allocation6], %s1900_s16, %s1900_s16, %s1901_s25  }
  0x3c   : > { %s1918_s2 = sld [smem:[#allocation23_spill]] }
  0x42   : > { %s1140_s14 = scalar_lea.hbm %s1918_s2, 256 }
  0x43   : > { %p1141_p1 = scmp.ne.s32.totalorder %s1918_s2, %s1140_s14  ;;  %p1147_p0 = scmp.lt.u32.totalorder %s1140_s14, %s1918_s2 }
  0x45   : > { %p1143_p2 = pnand %p1141_p1, %p1540_p12 }
  0x47   : > { %p1144_p6 = pneg %p1143_p2 }
  0x49   : > { %p1149_p3 = pnand %p1147_p0, %p1144_p6 }
  0x4b   : > { %1152 = shalt.err (!%p1149_p3)
}
  0x4c   : > { %s1153_s19 = scalar_lea.vmem %s1528_s22, 256  ;;  %p1161_p11 = scmp.lt.s32.totalorder %s1528_s22, %s1528_s22 }
  0x4d   : > { %p1154_p5 = scmp.ne.s32.totalorder %s1528_s22, %s1153_s19  ;;  %p1162_p13 = scmp.lt.s32.totalorder %s1153_s19, %s1153_s19 }
  0x4f   : > { %p1156_p7 = pnand %p1154_p5, %p1540_p12  ;;  %p1163_p1 = por %p1162_p13, %p1161_p11 }
  0x51   : > { %p1157_p9 = pneg %p1156_p7 }
  0x53   : > { %p1164_p2 = pnand %p1163_p1, %p1157_p9 }
  0x55   : > { %1167 = shalt.err (!%p1164_p2)
}
  0x56   : > { %1006 = dma.hbm_to_vmem [thread:$0]  (!%p1524_p10), %s1918_s2, 256, %s1528_s22, [#allocation6], %s1900_s16, %s1900_s16, %s1901_s25  }
  0x57   : > { %s1919_s3 = sld [smem:[#allocation24_spill]] }
  0x5d   : > { %s1168_s26 = scalar_lea.hbm %s1919_s3, 256 }
  0x5e   : > { %p1169_p6 = scmp.ne.s32.totalorder %s1919_s3, %s1168_s26  ;;  %p1175_p5 = scmp.lt.u32.totalorder %s1168_s26, %s1919_s3 }
  0x60   : > { %p1171_p0 = pnand %p1169_p6, %p1540_p12 }
  0x62   : > { %p1172_p3 = pneg %p1171_p0 }
  0x64   : > { %p1177_p7 = pnand %p1175_p5, %p1172_p3 }
  0x66   : > { %1180 = shalt.err (!%p1177_p7)
}
  0x67   : > { %s1181_s19 = scalar_lea.vmem %s303_s24, 256  ;;  %p1189_p1 = scmp.lt.s32.totalorder %s303_s24, %s303_s24 }
  0x68   : > { %p1182_p9 = scmp.ne.s32.totalorder %s303_s24, %s1181_s19  ;;  %p1190_p2 = scmp.lt.s32.totalorder %s1181_s19, %s1181_s19 }
  0x6a   : > { %p1184_p11 = pnand %p1182_p9, %p1540_p12  ;;  %p1191_p4 = por %p1190_p2, %p1189_p1 }
  0x6c   : > { %p1185_p13 = pneg %p1184_p11 }
  0x6e   : > { %p1192_p8 = pnand %p1191_p4, %p1185_p13 }
  0x70   : > { %1195 = shalt.err (!%p1192_p8)
}
  0x71   : > { %1009 = dma.hbm_to_vmem [thread:$0]  (!%p1524_p10), %s1919_s3, 256, %s303_s24, [#allocation9], %s1900_s16, %s1900_s16, %s1901_s25  }
  0x72   : > { %s39_s27 = sadd.s32 1, %s1384_s10  ;;  %s42_s20 = sadd.s32 1, %s1388_s11 }
  0x73   : > { %p40_p4 = scmp.ge.s32.totalorder %s39_s27, 2  ;;  %s51_s6 = sadd.s32 1, %s1372_s29 }
  0x74   : > { %p58_p8 = scmp.ne.s32.totalorder %s1372_s29, %s1368_s28  ;;  %p59_p12 = scmp.eq.s32.totalorder %s1392_s12, 0 }
  0x75   : > { %s1951_s27 = smov (%p40_p4, %s39_s27), 0  ;;  %s1953_s20 = smov (!%p40_p4, %s42_s20), %s1388_s11 }
  0x76   : > { %s47_s7 = ssub.s32 %s1384_s10, %s1951_s27  ;;  %p44_p6 = scmp.ge.s32.totalorder %s1953_s20, 2 }
  0x77   : > { %p1920_p0 = scmp.eq.s32.totalorder %s1493_s13, 3  ;;  %p1629_p10 = por %p59_p12, %p58_p8 }
  0x78   : > { %p1027_p5 = scmp.lt.s32.totalorder %s1392_s12, 4  ;;  %s1955_s20 = smov (%p44_p6, %s1953_s20), 0 }
  0x79   : > { %p1625_p3 = por %p1920_p0, %p58_p8  ;;  %1923 = sst [smem:[#allocation21_spill]] %s1955_s20 }
  0x7a   : > { %s322_s26 = sand.u32 1, %s1372_s29   ;;  %s898_s18 = sshll.u32 %s1384_s10, 1 }
  0x7b   : > { %s46_s21 = ssub.s32 %s1388_s11, %s1955_s20  ;;  %s897_s14 = sshll.u32 %s322_s26, 3 }
  0x7c   : > { %s48_s23 = sor.u32 %s47_s7, %s46_s21  ;;  %s899_s19 = sshll.u32 %s1388_s11, 2 }
  0x7d   : > { %p49_p7 = scmp.eq.s32.totalorder %s48_s23, 0  ;;  %s326_s22 = scalar_lea.vmem [#allocation2], %s897_s14 }
  0x7e   : > { %s335_s5 = sshll.u32 %s326_s22, 4  ;;  %s332_s25 = sadd.s32 %s899_s19, %s898_s18  ;;  %s1644_s5 = int_to_ptr.vmem [resolvable:$true] %s335_s5 }
  0x7f   : > { %s1642_s16 = scalar_select %p49_p7, %s1372_s29, %s51_s6  }
  0x80   : > { %s900_s1 = sshll.u32 %s332_s25, 6  ;;  %p1650_p9 = pnand %p1027_p5, %p1629_p10 }
  0x81   : > { %s1657_s7 = scalar_lea.hbm %s1882_s0, %s900_s1  ;;  %s1659_s6 = scalar_lea.sflag [#allocation3], %s322_s26 }
  0x82   : > { %s1196_s25 = scalar_lea.hbm %s1657_s7, 128  ;;  %p1198_p13 = pneg %p1650_p9 }
  0x83   : > { %p1197_p11 = scmp.ne.s32.totalorder %s1657_s7, %s1196_s25  ;;  %s1201_s20 = scalar_lea.hbm %s1882_s0, 512 }
  0x84   : > { %p1202_p4 = scmp.lt.u32.totalorder %s1657_s7, %s1882_s0  ;;  %p1203_p8 = scmp.lt.u32.totalorder %s1201_s20, %s1196_s25 }
  0x85   : > { %p1199_p1 = pnand %p1198_p13, %p1197_p11  ;;  %p1205_p6 = scmp.lt.u32.totalorder %s1196_s25, %s1657_s7 }
  0x86   : > { %p1204_p12 = por %p1203_p8, %p1202_p4 }
  0x87   : > { %p1200_p2 = pneg %p1199_p1 }
  0x88   : > { %p1206_p0 = por %p1205_p6, %p1204_p12 }
  0x8a   : > { %p1207_p10 = pnand %p1206_p0, %p1200_p2 }
  0x8c   : > { %1210 = shalt.err (!%p1207_p10)
}
  0x8d   : > { %s1211_s26 = scalar_lea.vmem %s1644_s5, 128  ;;  %s1399_s21 = smov [#allocation2]  }
  0x8e   : > { %p1212_p5 = scmp.ne.s32.totalorder %s1644_s5, %s1211_s26  ;;  %s1216_s23 = sshll.u32 %s1399_s21, 4  ;;  %s1217_s23 = int_to_ptr.vmem [resolvable:$false] %s1216_s23 }
  0x8f   : > { %s1218_s14 = scalar_lea.vmem %s1217_s23, 256  ;;  %p1219_p1 = scmp.lt.s32.totalorder %s1644_s5, %s1217_s23 }
  0x90   : > { %p1214_p7 = pnand %p1212_p5, %p1198_p13  ;;  %p1220_p4 = scmp.lt.s32.totalorder %s1218_s14, %s1211_s26 }
  0x92   : > { %p1215_p11 = pneg %p1214_p7  ;;  %p1221_p8 = por %p1220_p4, %p1219_p1 }
  0x94   : > { %p1222_p12 = pnand %p1221_p8, %p1215_p11 }
  0x96   : > { %1225 = shalt.err (!%p1222_p12)
}
  0x97   : > { %s1925_s19 = smov 4   ;;  %s1926_s22 = smov 64  }
  0x98   : > { %1013 = dma.hbm_to_vmem [thread:$0]  (!%p1650_p9), %s1657_s7, 128, %s1644_s5, %s1659_s6, %s1926_s22, %s1926_s22, %s1925_s19  }
  0x99   : > { %p1927_p13 = scmp.ne.s32.totalorder %s1914_s17, 0 }
  0x9a   : > { %s1693_s25 = sand.u32 (!%p1927_p13), 1, %s1368_s28   ;;  %p1928_p2 = scmp.ne.s32.totalorder (!%p1927_p13), %s1911_s15, 0 }
  0x9b   : > { %347 = sbr.rel (%p1927_p13) target bundleno = 464 (0x1d0), region = 44  ;;  %s1696_s24 = sshll.u32 (!%p1927_p13), %s1693_s25, 3 }
  0x9c   : > { %s350_s2 = scalar_lea.sflag (!%p1927_p13), [#allocation3], %s1693_s25  ;;  %s353_s3 = scalar_lea.vmem (!%p1927_p13), [#allocation2], %s1696_s24 }
  0xa2   : > { %1343 = dma.done.wait (%p1928_p2), %s350_s2, 128  }
  0xa3   : > { %1345 = vsyncadd (%p1928_p2), %s350_s2, 4294967168  ;;  %p1929_p9 = scmp.eq.s32.totalorder %s1493_s13, 0 }
  0xa5   : > { %1347 = dma.done.wait (%p1929_p9), [#allocation6], 512   ;;  %p1930_p6 = pmov %p1929_p9 }
  0xa7   : > { %1349 = vsyncadd (%p1930_p6), [#allocation6], 4294966784  ;;  %p1931_p0 = pmov %p1930_p6 }
  0xa9   : > { %1351 = dma.done.wait (%p1931_p0), [#allocation9], 256   ;;  %p1932_p10 = pmov %p1931_p0 }
  0xaa   : > { %v1400_v0 = vmov 0.0   ;;  %vm1401_vm0 = vmmov 0   ;;  %v1105_v1 = vld [vmem:[#allocation7] sm:$0xff]   ;;  %v1106_v2 = vld [vmem:[#allocation7 + $0x8] sm:$0xff]   ;;  %v1107_v3 = vld [vmem:[#allocation5] sm:$0xff]   ;;  %vm440_vm1 = vcmask 261120  }
  0xab   : > { %1353 = vsyncadd (%p1932_p10), [#allocation9], 4294967040  ;;  %956 = vmatprep.subr.bf16.mxu0 %v1400_v0  ;;  %964 = vmatprep.subr.bf16.mxu1 %v1400_v0  ;;  %v1109_v4 = vld [vmem:[#allocation5 + $0x8] sm:$0xff]   ;;  %v1108_v5 = vld [vmem:[%s353_s3] sm:$0xff]   ;;  %s930_s15 = sshll.u32 %s1376_s30, 1  ;;  %s931_s17 = sshll.u32 %s1380_s9, 2 }
  0xac   : > { %960 = vmatprep.mubr.msk.bf16.mxu0 %vm1401_vm0, %v1400_v0  ;;  %968 = vmatprep.mubr.msk.bf16.mxu1 %vm1401_vm0, %v1400_v0  ;;  %v1110_v6 = vld [vmem:[#allocation8] sm:$0xff]   ;;  %v1111_v7 = vld [vmem:[#allocation8 + $0x8] sm:$0xff]   ;;  %s665_s5 = sadd.s32 %s931_s17, %s930_s15  ;;  %s400_s7 = scalar_lea.vmem [#allocation11], %s1696_s24  ;;  %vm619_vm2 = vcmask 257024   ;;  %v913_v9 = vld [vmem:[%s1886_s4] ss:$0 sm:$0xff] }
  0xad   : > { %957 = vmatpush3.bf16.msra.mxu0 %v1105_v1  ;;  %965 = vmatpush3.bf16.msra.mxu1 %v1107_v3  ;;  %s686_s6 = sshll.u32 %s400_s7, 4  ;;  %s647_s20 = sand.u32 1, %s1493_s13   ;;  %s1724_s6 = int_to_ptr.vmem [resolvable:$true] %s686_s6 }
  0xae   : > { %958 = vmatprep.subr.bf16.mxu0 %v1400_v0  ;;  %966 = vmatprep.subr.bf16.mxu1 %v1400_v0  ;;  %s1722_s26 = sshll.u32 %s665_s5, 6  ;;  %s1933_s13 = sld [smem:[#allocation27_spill]] }
  0xaf   : > { %s1934_s19 = sld [smem:[#allocation25_spill]]  ;;  %s1738_s22 = scalar_lea.vmem [#allocation10], %s1696_s24 }
  0xb0   : > { %s668_s2 = sshll.u32 %s1738_s22, 4  ;;  %s1741_s3 = scalar_lea.sflag [#allocation12], %s647_s20  ;;  %s1778_s2 = int_to_ptr.vmem [resolvable:$true] %s668_s2 }
  0xb1   : > { %959 = vmatpush3.bf16.msra.mxu0 %v1106_v2  ;;  %967 = vmatpush3.bf16.msra.mxu1 %v1109_v4  ;;  %s1226_s15 = scalar_lea.vmem %s1724_s6, 128  ;;  %s1402_s17 = smov [#allocation11]  }
  0xb2   : > { %972 = vmatprep.subr.bf16.mxu0 %v1400_v0  ;;  %p1227_p5 = scmp.ne.s32.totalorder %s1724_s6, %s1226_s15  ;;  %s1230_s5 = sshll.u32 %s1402_s17, 4  ;;  %s1231_s5 = int_to_ptr.vmem [resolvable:$false] %s1230_s5 }
  0xb3   : > { %p1233_p1 = scmp.lt.s32.totalorder %s1724_s6, %s1231_s5 }
  0xb4   : > { %961 = vmatmul.mubr.msk.bf16.vlgmr.msra.gmra.mrb[0].mxu0 %vm440_vm1, %v1108_v5  ;;  %969 = vmatmul.mubr.msk.bf16.vlgmr.msra.gmra.mrb[0].mxu1 %vm440_vm1, %v1108_v5  ;;  %s1731_s21 = scalar_lea.hbm %s1933_s13, %s1722_s26  ;;  %p1228_p7 = pnand %p1227_p5, %p1625_p3 }
  0xb5   : > { %973 = vmatpush3.bf16.msra.mxu0 %v1110_v6  ;;  %976 = vmatprep.mubr.msk.bf16.mxu0 %vm1401_vm0, %v1400_v0  ;;  %v917_v22 = vld [vmem:[%s1934_s19] ss:$0 sm:$0xff] }
  0xb6   : > { %974 = vmatprep.subr.bf16.mxu0 %v1400_v0  ;;  %p1229_p11 = pneg %p1228_p7 }
  0xb9   : > { %975 = vmatpush3.bf16.msra.mxu0 %v1111_v7 }
  0xbc   : > { %977 = vmatmul.mubr.msk.bf16.vlgmr.msra.gmra.mrb[4].mxu0 %vm440_vm1, %v1108_v5 }
 0x187   : > { %v478_v8 = vpop.f32.mrb[0].mxu0  ;;  %v542_v13 = vpop.f32.mrb[0].mxu1 }
 0x188   : > { %v943_v10 = vpack.c.bf16 %v478_v8, %v478_v8  ;;  %v962_v11 = vpop.f32.mrb[1].mxu0  ;;  %v543_v16 = vadd.f32 %v913_v9, %v542_v13  ;;  %v970_v17 = vpop.f32.mrb[1].mxu1 }
 0x189   : > { %v481_v12 = vpop.f32.mrb[2].mxu0  ;;  %v545_v18 = vpop.f32.mrb[2].mxu1 }
 0x18a   : > { %630 = vst.msk [vmem:[%s400_s7] sm:$0xf] %vm619_vm2, %v943_v10  ;;  %v944_v14 = vpack.c.bf16 %v481_v12, %v481_v12  ;;  %v963_v15 = vpop.f32.mrb[3].mxu0  ;;  %v549_v19 = vmul.f32 0.35355338, %v543_v16  ;;  %v546_v20 = vadd.f32 %v913_v9, %v545_v18  ;;  %v971_v21 = vpop.f32.mrb[3].mxu1 }
 0x18c   : > { %631 = vst.msk [vmem:[%s400_s7 + $0x4] sm:$0xf] %vm619_vm2, %v944_v14  ;;  %s1232_s7 = scalar_lea.vmem %s1231_s5, 256 }
 0x18d   : > { %p1234_p4 = scmp.lt.s32.totalorder %s1232_s7, %s1226_s15 }
 0x18f   : > { %p1235_p8 = por %p1234_p4, %p1233_p1 }
 0x191   : > { %p1236_p12 = pnand %p1235_p8, %p1229_p11 }
 0x193   : > { %1239 = shalt.err (!%p1236_p12)
}
 0x194   : > { %s1240_s20 = scalar_lea.hbm %s1731_s21, 128  ;;  %s1244_s30 = scalar_lea.hbm %s1933_s13, 512 }
 0x195   : > { %p1241_p13 = scmp.ne.s32.totalorder %s1731_s21, %s1240_s20  ;;  %p1245_p6 = scmp.lt.u32.totalorder %s1731_s21, %s1933_s13 }
 0x196   : > { %p1246_p0 = scmp.lt.u32.totalorder %s1244_s30, %s1240_s20  ;;  %p1248_p5 = scmp.lt.u32.totalorder %s1240_s20, %s1731_s21 }
 0x197   : > { %p1242_p2 = pnand %p1241_p13, %p1625_p3 }
 0x198   : > { %p1247_p10 = por %p1246_p0, %p1245_p6 }
 0x199   : > { %p1243_p9 = pneg %p1242_p2 }
 0x19a   : > { %p1249_p7 = por %p1248_p5, %p1247_p10 }
 0x19c   : > { %p1250_p11 = pnand %p1249_p7, %p1243_p9 }
 0x19e   : > { %1253 = shalt.err (!%p1250_p11)
}
 0x19f   : > { %s1403_s14 = smov 64   ;;  %s1404_s19 = smov 4   ;;  %v941_v23 = vpack.c.bf16 %v549_v19, %v549_v19  ;;  %v550_v24 = vmul.f32 0.35355338, %v546_v20  ;;  %v604_v25 = vpop.f32.mrb[4].mxu0 }
 0x1a0   : > { %995 = dma.vmem_to_hbm [thread:$0]  (%p1625_p3), %s1724_s6, 128, %s1731_s21, %s1741_s3, %s1403_s14, %s1403_s14, %s1404_s19   ;;  %v605_v27 = vadd.f32 %v917_v22, %v604_v25  ;;  %v978_v28 = vpop.f32.mrb[5].mxu0 }
 0x1a1   : > { %620 = vst.msk [vmem:[%s1738_s22] sm:$0xf] %vm619_vm2, %v941_v23  ;;  %v942_v26 = vpack.c.bf16 %v550_v24, %v550_v24  ;;  %s1935_s5 = sld [smem:[#allocation26_spill]]  ;;  %s1781_s6 = scalar_lea.vmem [#allocation13], %s1696_s24  ;;  %v607_v29 = vpop.f32.mrb[6].mxu0 }
 0x1a2   : > { %s704_s21 = sshll.u32 %s1781_s6, 4  ;;  %v945_v30 = vpack.c.bf16 %v605_v27, %v605_v27  ;;  %v608_v31 = vadd.f32 %v917_v22, %v607_v29  ;;  %v979_v32 = vpop.f32.mrb[7].mxu0  ;;  %s643_s20 = scalar_lea.sflag [#allocation4], %s1693_s25  ;;  %s1817_s21 = int_to_ptr.vmem [resolvable:$true] %s704_s21 }
 0x1a3   : > { %621 = vst.msk [vmem:[%s1738_s22 + $0x4] sm:$0xf] %vm619_vm2, %v942_v26  ;;  %s1254_s1 = scalar_lea.vmem %s1778_s2, 128  ;;  %s1405_s18 = smov [#allocation10]  }
 0x1a4   : > { %p1255_p1 = scmp.ne.s32.totalorder %s1778_s2, %s1254_s1  ;;  %s1258_s30 = sshll.u32 %s1405_s18, 4  ;;  %s1259_s30 = int_to_ptr.vmem [resolvable:$false] %s1258_s30 }
 0x1a5   : > { %s1260_s24 = scalar_lea.vmem %s1259_s30, 256  ;;  %p1261_p12 = scmp.lt.s32.totalorder %s1778_s2, %s1259_s30 }
 0x1a6   : > { %p1256_p4 = pnand %p1255_p1, %p1625_p3  ;;  %p1262_p13 = scmp.lt.s32.totalorder %s1260_s24, %s1254_s1 }
 0x1a7   : > { %s1774_s7 = scalar_lea.hbm %s1935_s5, %s1722_s26 }
 0x1a8   : > { %p1257_p8 = pneg %p1256_p4  ;;  %p1263_p2 = por %p1262_p13, %p1261_p12 }
 0x1aa   : > { %p1264_p9 = pnand %p1263_p2, %p1257_p8 }
 0x1ac   : > { %1267 = shalt.err (!%p1264_p9)
}
 0x1ad   : > { %s1268_s22 = scalar_lea.hbm %s1774_s7, 128  ;;  %s1272_s15 = scalar_lea.hbm %s1935_s5, 512 }
 0x1ae   : > { %p1269_p6 = scmp.ne.s32.totalorder %s1774_s7, %s1268_s22  ;;  %p1273_p5 = scmp.lt.u32.totalorder %s1774_s7, %s1935_s5 }
 0x1af   : > { %p1274_p7 = scmp.lt.u32.totalorder %s1272_s15, %s1268_s22  ;;  %p1276_p1 = scmp.lt.u32.totalorder %s1268_s22, %s1774_s7 }
 0x1b0   : > { %p1270_p0 = pnand %p1269_p6, %p1625_p3 }
 0x1b1   : > { %p1275_p11 = por %p1274_p7, %p1273_p5 }
 0x1b2   : > { %p1271_p10 = pneg %p1270_p0 }
 0x1b3   : > { %p1277_p4 = por %p1276_p1, %p1275_p11 }
 0x1b5   : > { %p1278_p8 = pnand %p1277_p4, %p1271_p10 }
 0x1b7   : > { %1281 = shalt.err (!%p1278_p8)
}
 0x1b8   : > { %994 = dma.vmem_to_hbm [thread:$0]  (%p1625_p3), %s1778_s2, 128, %s1774_s7, %s643_s20, %s1403_s14, %s1403_s14, %s1404_s19   ;;  %v946_v33 = vpack.c.bf16 %v608_v31, %v608_v31 }
 0x1b9   : > { %640 = vst.msk [vmem:[%s1781_s6] sm:$0xf] %vm619_vm2, %v945_v30  ;;  %s1936_s25 = sld [smem:[#allocation28_spill]]  ;;  %s1282_s22 = scalar_lea.vmem %s1817_s21, 128 }
 0x1ba   : > { %641 = vst.msk [vmem:[%s1781_s6 + $0x4] sm:$0xf] %vm619_vm2, %v946_v33  ;;  %p1283_p12 = scmp.ne.s32.totalorder %s1817_s21, %s1282_s22  ;;  %s1406_s2 = smov [#allocation13]  }
 0x1bb   : > { %s1286_s7 = sshll.u32 %s1406_s2, 4  ;;  %s1287_s7 = int_to_ptr.vmem [resolvable:$false] %s1286_s7 }
 0x1bc   : > { %p1284_p13 = pnand %p1283_p12, %p1625_p3  ;;  %s1288_s20 = scalar_lea.vmem %s1287_s7, 256 }
 0x1bd   : > { %p1289_p9 = scmp.lt.s32.totalorder %s1817_s21, %s1287_s7  ;;  %p1290_p6 = scmp.lt.s32.totalorder %s1288_s20, %s1282_s22 }
 0x1be   : > { %p1285_p2 = pneg %p1284_p13 }
 0x1bf   : > { %s1823_s24 = scalar_lea.hbm %s1936_s25, %s1722_s26  ;;  %p1291_p0 = por %p1290_p6, %p1289_p9 }
 0x1c1   : > { %p1292_p10 = pnand %p1291_p0, %p1285_p2 }
 0x1c3   : > { %1295 = shalt.err (!%p1292_p10)
}
 0x1c4   : > { %s1296_s26 = scalar_lea.hbm %s1823_s24, 128  ;;  %s1300_s23 = scalar_lea.hbm %s1936_s25, 512 }
 0x1c5   : > { %p1297_p5 = scmp.ne.s32.totalorder %s1823_s24, %s1296_s26  ;;  %p1301_p1 = scmp.lt.u32.totalorder %s1823_s24, %s1936_s25 }
 0x1c6   : > { %p1302_p4 = scmp.lt.u32.totalorder %s1300_s23, %s1296_s26  ;;  %p1304_p12 = scmp.lt.u32.totalorder %s1296_s26, %s1823_s24 }
 0x1c7   : > { %p1298_p7 = pnand %p1297_p5, %p1625_p3 }
 0x1c8   : > { %p1303_p8 = por %p1302_p4, %p1301_p1 }
 0x1c9   : > { %p1299_p11 = pneg %p1298_p7 }
 0x1ca   : > { %p1305_p13 = por %p1304_p12, %p1303_p8 }
 0x1cc   : > { %p1306_p2 = pnand %p1305_p13, %p1299_p11 }
 0x1ce   : > { %1309 = shalt.err (!%p1306_p2)
}
 0x1cf   : > { %996 = dma.vmem_to_hbm [thread:$0]  (%p1625_p3), %s1817_s21, 128, %s1823_s24, %s1741_s3, %s1403_s14, %s1403_s14, %s1404_s19  }
 0x1d0 PF: > { %s1937_s18 = sld [smem:[#allocation19_spill]]  ;;  %s1938_s1 = sld [smem:[#allocation20_spill]] }
 0x1d1   : > { %p1031_p9 = scmp.ge.s32.totalorder %s1392_s12, 2 }
 0x1d6   : > { %s719_s30 = sand.u32 1, %s1937_s18   ;;  %p1939_p6 = scmp.ne.s32.totalorder %s1938_s1, 0 }
 0x1d7   : > { %s720_s22 = scalar_lea.sflag [#allocation4], %s719_s30 }
 0x1d8   : > { %p1015_p0 = pnand %p1031_p9, %p1939_p6 }
 0x1da   : > { %1355 = dma.done.wait (!%p1015_p0), %s720_s22, 128  }
 0x1db   : > { %1357 = vsyncadd (!%p1015_p0), %s720_s22, 4294967168  ;;  %s1940_s8 = sadd.s32 4294967294, %s1392_s12  }
 0x1dc   : > { %s728_s2 = sand.u32 1, %s1940_s8  }
 0x1dd   : > { %s729_s7 = scalar_lea.sflag [#allocation12], %s728_s2 }
 0x1de   : > { %1359 = dma.done.wait (!%p1015_p0), %s729_s7, 256  }
 0x1df   : > { %1361 = vsyncadd (!%p1015_p0), %s729_s7, 4294967040  ;;  %s30_s12 = sadd.s32 1, %s1392_s12   ;;  %s1941_s3 = smov %s1951_s27 }
 0x1e0   : > { %p27_p3 = scmp.ge.s32.totalorder %s30_s12, 6   ;;  %s1942_s14 = sld [smem:[#allocation21_spill]] }
 0x1e1   : > { %s1943_s27 = smov %s1368_s28  ;;  %s1944_s28 = smov %s1372_s29 }
 0x1e2   : > { %s1945_s29 = smov %s1642_s16  ;;  %s1946_s30 = smov %s1384_s10 }
 0x1e3   : > { %s1947_s9 = smov %s1388_s11  ;;  %s1948_s10 = smov %s1941_s3 }
 0x1e4   :  { %29 = sbr.rel (!%p27_p3) target bundleno = 19 (0x13), region = 133 }
 0x1e6   : > { %s1949_s11 = smov %s1942_s14 }
 0x1eb   :  { %743 = vsyncpa [#allocation3], 1 }
 0x1ec   :  { %745 = vsyncpa [#allocation3 + $0x1], 1 }
 0x1ed   :  { %746 = vsyncpa [#allocation6], 1 }
 0x1ee   :  { %747 = vsyncpa [#allocation9], 1 }
 0x1ef   :  { %748 = vsyncpa [#allocation4], 1 }
 0x1f0   :  { %750 = vsyncpa [#allocation4 + $0x1], 1 }
 0x1f1   :  { %751 = vsyncpa [#allocation12], 1 }
 0x1f2   :  { %753 = vsyncpa [#allocation12 + $0x1], 1 }

</bundles_post_ra>
